<compile_context>
chip_gen: v5e
topology: v5e:2x2
jax: 0.10.0
libtpu: 0.0.40
codegen_flags: <defaults>
</compile_context>

<pallas_src>
import jax
import jax.numpy as jnp
from jax.experimental import pallas as pl
from jax.experimental.pallas import tpu as pltpu

# ---------------- conv hyper-params (from the PyTorch module) ----------------
IN_CH, OUT_CH = 3, 1
KH = KW = 4
STRIDE = 2
PAD = 1
PHASES = STRIDE * STRIDE          # 4 spatial phases
CPQ = IN_CH * PHASES              # 12 phase-channels after space-to-depth
TAPS = KH // STRIDE               # 2 -> 2x2 stride-1 kernel after space-to-depth

LANE = 128
SUBLANE = 8


def _round_up(a, b):
    return (a + b - 1) // b * b


def conv_s2d_kernel(w_ref, b_ref, x_ref, o_ref):
    """Lane-dense VPU multiply-accumulate conv.

    w_ref: (48,) f32 in SMEM, ordered (c, p, q, a, b)
    b_ref: (1,)  f32 in SMEM
    x_ref: (TN, CPQ, R, W) f32 in VMEM  (R = roundup(OH+1, 8), W = roundup(OW+1, 128))
    o_ref: (TN, R, W) f32 in VMEM       (valid region is [:, :OH, :OW]; rest cropped)
    """
    tn, _, r, wl = x_ref.shape

    # a = 0 tap group (bias folded into the init) and a = 1 tap group.
    acc0 = jnp.full((tn, r, wl), b_ref[0], dtype=jnp.float32)
    acc1 = jnp.zeros((tn, r, wl), dtype=jnp.float32)

    for cpq in range(CPQ):                      # 12 phase-channels, fully unrolled
        xc = x_ref[:, cpq, :, :]                # (TN, R, W) contiguous, aligned
        # Column shift by one lane: xl[..., j] == xc[..., j+1]  (wrap lands in crop zone)
        xl = pltpu.roll(xc, wl - 1, axis=2)     # XLU slot, overlaps the VPU MACs
        base = 4 * cpq
        acc0 = acc0 + w_ref[base + 0] * xc + w_ref[base + 1] * xl
        acc1 = acc1 + w_ref[base + 2] * xc + w_ref[base + 3] * xl

    # Row shift by one sublane for the a = 1 taps: result[i] == acc1[i+1].
    o_ref[...] = acc0 + pltpu.roll(acc1, r - 1, axis=1)


def conv2d_pallas(x_nchw, weight, bias, *, batch_tile=None):
    """Conv2d(3->1, k=4, s=2, p=1).

    x_nchw: (N, 3, H, W) f32
    weight: (1, 3, 4, 4) f32   (PyTorch OIHW layout)
    bias:   (1,) f32
    returns (N, 1, OH, OW) f32 with OH = (H-2)//2 + 1, OW = (W-2)//2 + 1
    """
    n, c, h, w = x_nchw.shape
    assert c == IN_CH
    oh = (h + 2 * PAD - KH) // STRIDE + 1
    ow = (w + 2 * PAD - KW) // STRIDE + 1
    rows, cols = oh + 1, ow + 1                           # s2d grid incl. 1-row/col halo
    r_pad = _round_up(rows, SUBLANE)                      # sublane-aligned
    w_pad = _round_up(cols, LANE)                         # lane-dense

    # Spatial zero-pad so the padded dims are exactly 2*rows x 2*cols (handles odd H/W).
    pad_b = 2 * rows - h - PAD
    pad_r = 2 * cols - w - PAD
    xp = jnp.pad(x_nchw, ((0, 0), (0, 0), (PAD, pad_b), (PAD, pad_r)))
    # Space-to-depth: stride-2 4x4 conv == stride-1 2x2 conv over C*4 phase channels.
    xs = xp.reshape(n, c, rows, STRIDE, cols, STRIDE)     # [n, c, r, p, s, q]
    xs = xs.transpose(0, 1, 3, 5, 2, 4).reshape(n, CPQ, rows, cols)

    # Flatten weights to (48,) in (c, p, q, a, b) order (kernel index = 4*cpq + 2a + b).
    w5 = weight.reshape(OUT_CH, IN_CH, TAPS, STRIDE, TAPS, STRIDE)[0]   # [c, a, p, b, q]
    w_flat = w5.transpose(0, 2, 4, 1, 3).reshape(-1).astype(jnp.float32)
    b_vec = bias.reshape(OUT_CH).astype(jnp.float32)

    # ------------------- VMEM-aware batch-tile selection -------------------
    per_b_in = CPQ * r_pad * w_pad * 4        # bytes of one batch element's input block
    per_b_out = r_pad * w_pad * 4
    try:
        vmem_cap = pltpu.get_tpu_info().vmem_capacity_bytes
    except Exception:
        vmem_cap = 64 << 20                   # conservative (v7x per-TC VMEM)
    budget = int(vmem_cap * 0.45)             # leave headroom for double-buffering etc.
    tn_vmem = max(1, budget // (2 * (per_b_in + per_b_out)))
    # Keep each f32 register accumulator <= ~16 vregs (64 KiB) to avoid spills.
    tn_reg = max(1, (64 << 10) // (r_pad * w_pad * 4))
    if batch_tile is not None:
        tn = batch_tile
    else:
        tn = min(n, tn_vmem, tn_reg)
        if n >= 2:
            tn = min(tn, (n + 1) // 2)        # >= 2 parallel grid steps (v7x: 2 TCs)
    tn = max(1, tn)

    n_pad = _round_up(n, tn)
    # One pad for batch tiling + sublane/lane density (zeros -> finite garbage, cropped).
    xs = jnp.pad(xs, ((0, n_pad - n), (0, 0), (0, r_pad - rows), (0, w_pad - cols)))

    vmem_need = 2 * tn * (per_b_in + per_b_out) + (4 << 20)
    vmem_limit = int(min(max(vmem_need, 32 << 20), int(vmem_cap * 0.9)))

    grid = (n_pad // tn,)
    out = pl.pallas_call(
        conv_s2d_kernel,
        out_shape=jax.ShapeDtypeStruct((n_pad, r_pad, w_pad), jnp.float32),
        grid_spec=pltpu.PrefetchScalarGridSpec(
            num_scalar_prefetch=0,
            grid=grid,
            in_specs=[
                pl.BlockSpec(memory_space=pltpu.MemorySpace.SMEM),   # weights (48,)
                pl.BlockSpec(memory_space=pltpu.MemorySpace.SMEM),   # bias (1,)
                pl.BlockSpec((tn, CPQ, r_pad, w_pad), lambda i: (i, 0, 0, 0)),
            ],
            out_specs=pl.BlockSpec((tn, r_pad, w_pad), lambda i: (i, 0, 0)),
        ),
        compiler_params=pltpu.CompilerParams(
            dimension_semantics=("parallel",),
            vmem_limit_bytes=vmem_limit,
        ),
    )(w_flat, b_vec, xs)

    # Crop batch / sublane / lane padding once, then restore NCHW.
    return out[:n, :oh, :ow].reshape(n, OUT_CH, oh, ow)


if __name__ == "__main__":
    key = jax.random.PRNGKey(0)
    kx, kw, kb = jax.random.split(key, 3)

    # Small shapes consistent with the module: batch=2, channels=3, spatial=16.
    x = jax.random.normal(kx, (2, IN_CH, 16, 16), dtype=jnp.float32)

    # Deterministic parameter init (PyTorch Conv2d shapes: weight OIHW, bias (OC,)).
    fan_in = IN_CH * KH * KW
    bound = 1.0 / (fan_in ** 0.5)
    weight = jax.random.uniform(kw, (OUT_CH, IN_CH, KH, KW),
                                minval=-bound, maxval=bound, dtype=jnp.float32)
    bias = jax.random.uniform(kb, (OUT_CH,), minval=-bound, maxval=bound,
                              dtype=jnp.float32)

    y = conv2d_pallas(x, weight, bias)
    y = jax.block_until_ready(y)

    # Sanity check against XLA's conv (plain JAX reference).
    y_ref = jax.lax.conv_general_dilated(
        x, weight, window_strides=(STRIDE, STRIDE),
        padding=((PAD, PAD), (PAD, PAD)),
        dimension_numbers=("NCHW", "OIHW", "NCHW")) + bias.reshape(1, OUT_CH, 1, 1)
    assert y.shape == (2, OUT_CH, 8, 8), y.shape
    assert jnp.allclose(y, y_ref, atol=1e-5, rtol=1e-5), \
        float(jnp.max(jnp.abs(y - y_ref)))

    print("KERNEL_OK")
</pallas_src>

<mosaic_0001>
module attributes {stable_mosaic.version = 11 : i64} {
  func.func @conv_s2d_kernel(%arg0: i32, %arg1: memref<48xf32, #tpu.memory_space<smem>>, %arg2: memref<1xf32, #tpu.memory_space<smem>>, %arg3: memref<1x12x16x128xf32, #tpu.memory_space<vmem>>, %arg4: memref<1x16x128xf32, #tpu.memory_space<vmem>>) attributes {dimension_semantics = [#tpu.dimension_semantics<parallel>], iteration_bounds = array<i64: 2>, scalar_prefetch = 0 : i64, scratch_operands = 0 : i64, tpu.core_type = #tpu.core_type<tc>, window_params = [{transform_indices = @transform_0, window_bounds = array<i64: 48>}, {transform_indices = @transform_1, window_bounds = array<i64: 1>}, {transform_indices = @transform_2, window_bounds = array<i64: 1, 12, 16, 128>}, {transform_indices = @transform_3, window_bounds = array<i64: 1, 16, 128>}]} {
    %c0 = arith.constant 0 : index
    %0 = memref.load %arg2[%c0] : memref<1xf32, #tpu.memory_space<smem>>
    %1 = vector.broadcast %0 : f32 to vector<1x16x128xf32>
    %cst = arith.constant 0.000000e+00 : f32
    %2 = vector.broadcast %cst : f32 to vector<1x16x128xf32>
    %c0_0 = arith.constant 0 : index
    %c0_1 = arith.constant 0 : index
    %c0_2 = arith.constant 0 : index
    %c0_3 = arith.constant 0 : index
    %3 = vector.load %arg3[%c0_0, %c0_1, %c0_2, %c0_3] : memref<1x12x16x128xf32, #tpu.memory_space<vmem>>, vector<1x1x16x128xf32>
    %4 = vector.shape_cast %3 : vector<1x1x16x128xf32> to vector<1x16x128xf32>
    %c127_i32 = arith.constant 127 : i32
    %5 = tpu.dynamic_rotate %4 by %c127_i32 dim 2 : vector<1x16x128xf32>, i32 -> vector<1x16x128xf32>
    %c0_4 = arith.constant 0 : index
    %6 = memref.load %arg1[%c0_4] : memref<48xf32, #tpu.memory_space<smem>>
    %7 = vector.broadcast %6 : f32 to vector<1x16x128xf32>
    %8 = arith.mulf %7, %4 : vector<1x16x128xf32>
    %9 = arith.addf %1, %8 : vector<1x16x128xf32>
    %c1 = arith.constant 1 : index
    %10 = memref.load %arg1[%c1] : memref<48xf32, #tpu.memory_space<smem>>
    %11 = vector.broadcast %10 : f32 to vector<1x16x128xf32>
    %12 = arith.mulf %11, %5 : vector<1x16x128xf32>
    %13 = arith.addf %9, %12 : vector<1x16x128xf32>
    %c2 = arith.constant 2 : index
    %14 = memref.load %arg1[%c2] : memref<48xf32, #tpu.memory_space<smem>>
    %15 = vector.broadcast %14 : f32 to vector<1x16x128xf32>
    %16 = arith.mulf %15, %4 : vector<1x16x128xf32>
    %17 = arith.addf %2, %16 : vector<1x16x128xf32>
    %c3 = arith.constant 3 : index
    %18 = memref.load %arg1[%c3] : memref<48xf32, #tpu.memory_space<smem>>
    %19 = vector.broadcast %18 : f32 to vector<1x16x128xf32>
    %20 = arith.mulf %19, %5 : vector<1x16x128xf32>
    %21 = arith.addf %17, %20 : vector<1x16x128xf32>
    %c0_5 = arith.constant 0 : index
    %c1_6 = arith.constant 1 : index
    %c0_7 = arith.constant 0 : index
    %c0_8 = arith.constant 0 : index
    %22 = vector.load %arg3[%c0_5, %c1_6, %c0_7, %c0_8] : memref<1x12x16x128xf32, #tpu.memory_space<vmem>>, vector<1x1x16x128xf32>
    %23 = vector.shape_cast %22 : vector<1x1x16x128xf32> to vector<1x16x128xf32>
    %c127_i32_9 = arith.constant 127 : i32
    %24 = tpu.dynamic_rotate %23 by %c127_i32_9 dim 2 : vector<1x16x128xf32>, i32 -> vector<1x16x128xf32>
    %c4 = arith.constant 4 : index
    %25 = memref.load %arg1[%c4] : memref<48xf32, #tpu.memory_space<smem>>
    %26 = vector.broadcast %25 : f32 to vector<1x16x128xf32>
    %27 = arith.mulf %26, %23 : vector<1x16x128xf32>
    %28 = arith.addf %13, %27 : vector<1x16x128xf32>
    %c5 = arith.constant 5 : index
    %29 = memref.load %arg1[%c5] : memref<48xf32, #tpu.memory_space<smem>>
    %30 = vector.broadcast %29 : f32 to vector<1x16x128xf32>
    %31 = arith.mulf %30, %24 : vector<1x16x128xf32>
    %32 = arith.addf %28, %31 : vector<1x16x128xf32>
    %c6 = arith.constant 6 : index
    %33 = memref.load %arg1[%c6] : memref<48xf32, #tpu.memory_space<smem>>
    %34 = vector.broadcast %33 : f32 to vector<1x16x128xf32>
    %35 = arith.mulf %34, %23 : vector<1x16x128xf32>
    %36 = arith.addf %21, %35 : vector<1x16x128xf32>
    %c7 = arith.constant 7 : index
    %37 = memref.load %arg1[%c7] : memref<48xf32, #tpu.memory_space<smem>>
    %38 = vector.broadcast %37 : f32 to vector<1x16x128xf32>
    %39 = arith.mulf %38, %24 : vector<1x16x128xf32>
    %40 = arith.addf %36, %39 : vector<1x16x128xf32>
    %c0_10 = arith.constant 0 : index
    %c2_11 = arith.constant 2 : index
    %c0_12 = arith.constant 0 : index
    %c0_13 = arith.constant 0 : index
    %41 = vector.load %arg3[%c0_10, %c2_11, %c0_12, %c0_13] : memref<1x12x16x128xf32, #tpu.memory_space<vmem>>, vector<1x1x16x128xf32>
    %42 = vector.shape_cast %41 : vector<1x1x16x128xf32> to vector<1x16x128xf32>
    %c127_i32_14 = arith.constant 127 : i32
    %43 = tpu.dynamic_rotate %42 by %c127_i32_14 dim 2 : vector<1x16x128xf32>, i32 -> vector<1x16x128xf32>
    %c8 = arith.constant 8 : index
    %44 = memref.load %arg1[%c8] : memref<48xf32, #tpu.memory_space<smem>>
    %45 = vector.broadcast %44 : f32 to vector<1x16x128xf32>
    %46 = arith.mulf %45, %42 : vector<1x16x128xf32>
    %47 = arith.addf %32, %46 : vector<1x16x128xf32>
    %c9 = arith.constant 9 : index
    %48 = memref.load %arg1[%c9] : memref<48xf32, #tpu.memory_space<smem>>
    %49 = vector.broadcast %48 : f32 to vector<1x16x128xf32>
    %50 = arith.mulf %49, %43 : vector<1x16x128xf32>
    %51 = arith.addf %47, %50 : vector<1x16x128xf32>
    %c10 = arith.constant 10 : index
    %52 = memref.load %arg1[%c10] : memref<48xf32, #tpu.memory_space<smem>>
    %53 = vector.broadcast %52 : f32 to vector<1x16x128xf32>
    %54 = arith.mulf %53, %42 : vector<1x16x128xf32>
    %55 = arith.addf %40, %54 : vector<1x16x128xf32>
    %c11 = arith.constant 11 : index
    %56 = memref.load %arg1[%c11] : memref<48xf32, #tpu.memory_space<smem>>
    %57 = vector.broadcast %56 : f32 to vector<1x16x128xf32>
    %58 = arith.mulf %57, %43 : vector<1x16x128xf32>
    %59 = arith.addf %55, %58 : vector<1x16x128xf32>
    %c0_15 = arith.constant 0 : index
    %c3_16 = arith.constant 3 : index
    %c0_17 = arith.constant 0 : index
    %c0_18 = arith.constant 0 : index
    %60 = vector.load %arg3[%c0_15, %c3_16, %c0_17, %c0_18] : memref<1x12x16x128xf32, #tpu.memory_space<vmem>>, vector<1x1x16x128xf32>
    %61 = vector.shape_cast %60 : vector<1x1x16x128xf32> to vector<1x16x128xf32>
    %c127_i32_19 = arith.constant 127 : i32
    %62 = tpu.dynamic_rotate %61 by %c127_i32_19 dim 2 : vector<1x16x128xf32>, i32 -> vector<1x16x128xf32>
    %c12 = arith.constant 12 : index
    %63 = memref.load %arg1[%c12] : memref<48xf32, #tpu.memory_space<smem>>
    %64 = vector.broadcast %63 : f32 to vector<1x16x128xf32>
    %65 = arith.mulf %64, %61 : vector<1x16x128xf32>
    %66 = arith.addf %51, %65 : vector<1x16x128xf32>
    %c13 = arith.constant 13 : index
    %67 = memref.load %arg1[%c13] : memref<48xf32, #tpu.memory_space<smem>>
    %68 = vector.broadcast %67 : f32 to vector<1x16x128xf32>
    %69 = arith.mulf %68, %62 : vector<1x16x128xf32>
    %70 = arith.addf %66, %69 : vector<1x16x128xf32>
    %c14 = arith.constant 14 : index
    %71 = memref.load %arg1[%c14] : memref<48xf32, #tpu.memory_space<smem>>
    %72 = vector.broadcast %71 : f32 to vector<1x16x128xf32>
    %73 = arith.mulf %72, %61 : vector<1x16x128xf32>
    %74 = arith.addf %59, %73 : vector<1x16x128xf32>
    %c15 = arith.constant 15 : index
    %75 = memref.load %arg1[%c15] : memref<48xf32, #tpu.memory_space<smem>>
    %76 = vector.broadcast %75 : f32 to vector<1x16x128xf32>
    %77 = arith.mulf %76, %62 : vector<1x16x128xf32>
    %78 = arith.addf %74, %77 : vector<1x16x128xf32>
    %c0_20 = arith.constant 0 : index
    %c4_21 = arith.constant 4 : index
    %c0_22 = arith.constant 0 : index
    %c0_23 = arith.constant 0 : index
    %79 = vector.load %arg3[%c0_20, %c4_21, %c0_22, %c0_23] : memref<1x12x16x128xf32, #tpu.memory_space<vmem>>, vector<1x1x16x128xf32>
    %80 = vector.shape_cast %79 : vector<1x1x16x128xf32> to vector<1x16x128xf32>
    %c127_i32_24 = arith.constant 127 : i32
    %81 = tpu.dynamic_rotate %80 by %c127_i32_24 dim 2 : vector<1x16x128xf32>, i32 -> vector<1x16x128xf32>
    %c16 = arith.constant 16 : index
    %82 = memref.load %arg1[%c16] : memref<48xf32, #tpu.memory_space<smem>>
    %83 = vector.broadcast %82 : f32 to vector<1x16x128xf32>
    %84 = arith.mulf %83, %80 : vector<1x16x128xf32>
    %85 = arith.addf %70, %84 : vector<1x16x128xf32>
    %c17 = arith.constant 17 : index
    %86 = memref.load %arg1[%c17] : memref<48xf32, #tpu.memory_space<smem>>
    %87 = vector.broadcast %86 : f32 to vector<1x16x128xf32>
    %88 = arith.mulf %87, %81 : vector<1x16x128xf32>
    %89 = arith.addf %85, %88 : vector<1x16x128xf32>
    %c18 = arith.constant 18 : index
    %90 = memref.load %arg1[%c18] : memref<48xf32, #tpu.memory_space<smem>>
    %91 = vector.broadcast %90 : f32 to vector<1x16x128xf32>
    %92 = arith.mulf %91, %80 : vector<1x16x128xf32>
    %93 = arith.addf %78, %92 : vector<1x16x128xf32>
    %c19 = arith.constant 19 : index
    %94 = memref.load %arg1[%c19] : memref<48xf32, #tpu.memory_space<smem>>
    %95 = vector.broadcast %94 : f32 to vector<1x16x128xf32>
    %96 = arith.mulf %95, %81 : vector<1x16x128xf32>
    %97 = arith.addf %93, %96 : vector<1x16x128xf32>
    %c0_25 = arith.constant 0 : index
    %c5_26 = arith.constant 5 : index
    %c0_27 = arith.constant 0 : index
    %c0_28 = arith.constant 0 : index
    %98 = vector.load %arg3[%c0_25, %c5_26, %c0_27, %c0_28] : memref<1x12x16x128xf32, #tpu.memory_space<vmem>>, vector<1x1x16x128xf32>
    %99 = vector.shape_cast %98 : vector<1x1x16x128xf32> to vector<1x16x128xf32>
    %c127_i32_29 = arith.constant 127 : i32
    %100 = tpu.dynamic_rotate %99 by %c127_i32_29 dim 2 : vector<1x16x128xf32>, i32 -> vector<1x16x128xf32>
    %c20 = arith.constant 20 : index
    %101 = memref.load %arg1[%c20] : memref<48xf32, #tpu.memory_space<smem>>
    %102 = vector.broadcast %101 : f32 to vector<1x16x128xf32>
    %103 = arith.mulf %102, %99 : vector<1x16x128xf32>
    %104 = arith.addf %89, %103 : vector<1x16x128xf32>
    %c21 = arith.constant 21 : index
    %105 = memref.load %arg1[%c21] : memref<48xf32, #tpu.memory_space<smem>>
    %106 = vector.broadcast %105 : f32 to vector<1x16x128xf32>
    %107 = arith.mulf %106, %100 : vector<1x16x128xf32>
    %108 = arith.addf %104, %107 : vector<1x16x128xf32>
    %c22 = arith.constant 22 : index
    %109 = memref.load %arg1[%c22] : memref<48xf32, #tpu.memory_space<smem>>
    %110 = vector.broadcast %109 : f32 to vector<1x16x128xf32>
    %111 = arith.mulf %110, %99 : vector<1x16x128xf32>
    %112 = arith.addf %97, %111 : vector<1x16x128xf32>
    %c23 = arith.constant 23 : index
    %113 = memref.load %arg1[%c23] : memref<48xf32, #tpu.memory_space<smem>>
    %114 = vector.broadcast %113 : f32 to vector<1x16x128xf32>
    %115 = arith.mulf %114, %100 : vector<1x16x128xf32>
    %116 = arith.addf %112, %115 : vector<1x16x128xf32>
    %c0_30 = arith.constant 0 : index
    %c6_31 = arith.constant 6 : index
    %c0_32 = arith.constant 0 : index
    %c0_33 = arith.constant 0 : index
    %117 = vector.load %arg3[%c0_30, %c6_31, %c0_32, %c0_33] : memref<1x12x16x128xf32, #tpu.memory_space<vmem>>, vector<1x1x16x128xf32>
    %118 = vector.shape_cast %117 : vector<1x1x16x128xf32> to vector<1x16x128xf32>
    %c127_i32_34 = arith.constant 127 : i32
    %119 = tpu.dynamic_rotate %118 by %c127_i32_34 dim 2 : vector<1x16x128xf32>, i32 -> vector<1x16x128xf32>
    %c24 = arith.constant 24 : index
    %120 = memref.load %arg1[%c24] : memref<48xf32, #tpu.memory_space<smem>>
    %121 = vector.broadcast %120 : f32 to vector<1x16x128xf32>
    %122 = arith.mulf %121, %118 : vector<1x16x128xf32>
    %123 = arith.addf %108, %122 : vector<1x16x128xf32>
    %c25 = arith.constant 25 : index
    %124 = memref.load %arg1[%c25] : memref<48xf32, #tpu.memory_space<smem>>
    %125 = vector.broadcast %124 : f32 to vector<1x16x128xf32>
    %126 = arith.mulf %125, %119 : vector<1x16x128xf32>
    %127 = arith.addf %123, %126 : vector<1x16x128xf32>
    %c26 = arith.constant 26 : index
    %128 = memref.load %arg1[%c26] : memref<48xf32, #tpu.memory_space<smem>>
    %129 = vector.broadcast %128 : f32 to vector<1x16x128xf32>
    %130 = arith.mulf %129, %118 : vector<1x16x128xf32>
    %131 = arith.addf %116, %130 : vector<1x16x128xf32>
    %c27 = arith.constant 27 : index
    %132 = memref.load %arg1[%c27] : memref<48xf32, #tpu.memory_space<smem>>
    %133 = vector.broadcast %132 : f32 to vector<1x16x128xf32>
    %134 = arith.mulf %133, %119 : vector<1x16x128xf32>
    %135 = arith.addf %131, %134 : vector<1x16x128xf32>
    %c0_35 = arith.constant 0 : index
    %c7_36 = arith.constant 7 : index
    %c0_37 = arith.constant 0 : index
    %c0_38 = arith.constant 0 : index
    %136 = vector.load %arg3[%c0_35, %c7_36, %c0_37, %c0_38] : memref<1x12x16x128xf32, #tpu.memory_space<vmem>>, vector<1x1x16x128xf32>
    %137 = vector.shape_cast %136 : vector<1x1x16x128xf32> to vector<1x16x128xf32>
    %c127_i32_39 = arith.constant 127 : i32
    %138 = tpu.dynamic_rotate %137 by %c127_i32_39 dim 2 : vector<1x16x128xf32>, i32 -> vector<1x16x128xf32>
    %c28 = arith.constant 28 : index
    %139 = memref.load %arg1[%c28] : memref<48xf32, #tpu.memory_space<smem>>
    %140 = vector.broadcast %139 : f32 to vector<1x16x128xf32>
    %141 = arith.mulf %140, %137 : vector<1x16x128xf32>
    %142 = arith.addf %127, %141 : vector<1x16x128xf32>
    %c29 = arith.constant 29 : index
    %143 = memref.load %arg1[%c29] : memref<48xf32, #tpu.memory_space<smem>>
    %144 = vector.broadcast %143 : f32 to vector<1x16x128xf32>
    %145 = arith.mulf %144, %138 : vector<1x16x128xf32>
    %146 = arith.addf %142, %145 : vector<1x16x128xf32>
    %c30 = arith.constant 30 : index
    %147 = memref.load %arg1[%c30] : memref<48xf32, #tpu.memory_space<smem>>
    %148 = vector.broadcast %147 : f32 to vector<1x16x128xf32>
    %149 = arith.mulf %148, %137 : vector<1x16x128xf32>
    %150 = arith.addf %135, %149 : vector<1x16x128xf32>
    %c31 = arith.constant 31 : index
    %151 = memref.load %arg1[%c31] : memref<48xf32, #tpu.memory_space<smem>>
    %152 = vector.broadcast %151 : f32 to vector<1x16x128xf32>
    %153 = arith.mulf %152, %138 : vector<1x16x128xf32>
    %154 = arith.addf %150, %153 : vector<1x16x128xf32>
    %c0_40 = arith.constant 0 : index
    %c8_41 = arith.constant 8 : index
    %c0_42 = arith.constant 0 : index
    %c0_43 = arith.constant 0 : index
    %155 = vector.load %arg3[%c0_40, %c8_41, %c0_42, %c0_43] : memref<1x12x16x128xf32, #tpu.memory_space<vmem>>, vector<1x1x16x128xf32>
    %156 = vector.shape_cast %155 : vector<1x1x16x128xf32> to vector<1x16x128xf32>
    %c127_i32_44 = arith.constant 127 : i32
    %157 = tpu.dynamic_rotate %156 by %c127_i32_44 dim 2 : vector<1x16x128xf32>, i32 -> vector<1x16x128xf32>
    %c32 = arith.constant 32 : index
    %158 = memref.load %arg1[%c32] : memref<48xf32, #tpu.memory_space<smem>>
    %159 = vector.broadcast %158 : f32 to vector<1x16x128xf32>
    %160 = arith.mulf %159, %156 : vector<1x16x128xf32>
    %161 = arith.addf %146, %160 : vector<1x16x128xf32>
    %c33 = arith.constant 33 : index
    %162 = memref.load %arg1[%c33] : memref<48xf32, #tpu.memory_space<smem>>
    %163 = vector.broadcast %162 : f32 to vector<1x16x128xf32>
    %164 = arith.mulf %163, %157 : vector<1x16x128xf32>
    %165 = arith.addf %161, %164 : vector<1x16x128xf32>
    %c34 = arith.constant 34 : index
    %166 = memref.load %arg1[%c34] : memref<48xf32, #tpu.memory_space<smem>>
    %167 = vector.broadcast %166 : f32 to vector<1x16x128xf32>
    %168 = arith.mulf %167, %156 : vector<1x16x128xf32>
    %169 = arith.addf %154, %168 : vector<1x16x128xf32>
    %c35 = arith.constant 35 : index
    %170 = memref.load %arg1[%c35] : memref<48xf32, #tpu.memory_space<smem>>
    %171 = vector.broadcast %170 : f32 to vector<1x16x128xf32>
    %172 = arith.mulf %171, %157 : vector<1x16x128xf32>
    %173 = arith.addf %169, %172 : vector<1x16x128xf32>
    %c0_45 = arith.constant 0 : index
    %c9_46 = arith.constant 9 : index
    %c0_47 = arith.constant 0 : index
    %c0_48 = arith.constant 0 : index
    %174 = vector.load %arg3[%c0_45, %c9_46, %c0_47, %c0_48] : memref<1x12x16x128xf32, #tpu.memory_space<vmem>>, vector<1x1x16x128xf32>
    %175 = vector.shape_cast %174 : vector<1x1x16x128xf32> to vector<1x16x128xf32>
    %c127_i32_49 = arith.constant 127 : i32
    %176 = tpu.dynamic_rotate %175 by %c127_i32_49 dim 2 : vector<1x16x128xf32>, i32 -> vector<1x16x128xf32>
    %c36 = arith.constant 36 : index
    %177 = memref.load %arg1[%c36] : memref<48xf32, #tpu.memory_space<smem>>
    %178 = vector.broadcast %177 : f32 to vector<1x16x128xf32>
    %179 = arith.mulf %178, %175 : vector<1x16x128xf32>
    %180 = arith.addf %165, %179 : vector<1x16x128xf32>
    %c37 = arith.constant 37 : index
    %181 = memref.load %arg1[%c37] : memref<48xf32, #tpu.memory_space<smem>>
    %182 = vector.broadcast %181 : f32 to vector<1x16x128xf32>
    %183 = arith.mulf %182, %176 : vector<1x16x128xf32>
    %184 = arith.addf %180, %183 : vector<1x16x128xf32>
    %c38 = arith.constant 38 : index
    %185 = memref.load %arg1[%c38] : memref<48xf32, #tpu.memory_space<smem>>
    %186 = vector.broadcast %185 : f32 to vector<1x16x128xf32>
    %187 = arith.mulf %186, %175 : vector<1x16x128xf32>
    %188 = arith.addf %173, %187 : vector<1x16x128xf32>
    %c39 = arith.constant 39 : index
    %189 = memref.load %arg1[%c39] : memref<48xf32, #tpu.memory_space<smem>>
    %190 = vector.broadcast %189 : f32 to vector<1x16x128xf32>
    %191 = arith.mulf %190, %176 : vector<1x16x128xf32>
    %192 = arith.addf %188, %191 : vector<1x16x128xf32>
    %c0_50 = arith.constant 0 : index
    %c10_51 = arith.constant 10 : index
    %c0_52 = arith.constant 0 : index
    %c0_53 = arith.constant 0 : index
    %193 = vector.load %arg3[%c0_50, %c10_51, %c0_52, %c0_53] : memref<1x12x16x128xf32, #tpu.memory_space<vmem>>, vector<1x1x16x128xf32>
    %194 = vector.shape_cast %193 : vector<1x1x16x128xf32> to vector<1x16x128xf32>
    %c127_i32_54 = arith.constant 127 : i32
    %195 = tpu.dynamic_rotate %194 by %c127_i32_54 dim 2 : vector<1x16x128xf32>, i32 -> vector<1x16x128xf32>
    %c40 = arith.constant 40 : index
    %196 = memref.load %arg1[%c40] : memref<48xf32, #tpu.memory_space<smem>>
    %197 = vector.broadcast %196 : f32 to vector<1x16x128xf32>
    %198 = arith.mulf %197, %194 : vector<1x16x128xf32>
    %199 = arith.addf %184, %198 : vector<1x16x128xf32>
    %c41 = arith.constant 41 : index
    %200 = memref.load %arg1[%c41] : memref<48xf32, #tpu.memory_space<smem>>
    %201 = vector.broadcast %200 : f32 to vector<1x16x128xf32>
    %202 = arith.mulf %201, %195 : vector<1x16x128xf32>
    %203 = arith.addf %199, %202 : vector<1x16x128xf32>
    %c42 = arith.constant 42 : index
    %204 = memref.load %arg1[%c42] : memref<48xf32, #tpu.memory_space<smem>>
    %205 = vector.broadcast %204 : f32 to vector<1x16x128xf32>
    %206 = arith.mulf %205, %194 : vector<1x16x128xf32>
    %207 = arith.addf %192, %206 : vector<1x16x128xf32>
    %c43 = arith.constant 43 : index
    %208 = memref.load %arg1[%c43] : memref<48xf32, #tpu.memory_space<smem>>
    %209 = vector.broadcast %208 : f32 to vector<1x16x128xf32>
    %210 = arith.mulf %209, %195 : vector<1x16x128xf32>
    %211 = arith.addf %207, %210 : vector<1x16x128xf32>
    %c0_55 = arith.constant 0 : index
    %c11_56 = arith.constant 11 : index
    %c0_57 = arith.constant 0 : index
    %c0_58 = arith.constant 0 : index
    %212 = vector.load %arg3[%c0_55, %c11_56, %c0_57, %c0_58] : memref<1x12x16x128xf32, #tpu.memory_space<vmem>>, vector<1x1x16x128xf32>
    %213 = vector.shape_cast %212 : vector<1x1x16x128xf32> to vector<1x16x128xf32>
    %c127_i32_59 = arith.constant 127 : i32
    %214 = tpu.dynamic_rotate %213 by %c127_i32_59 dim 2 : vector<1x16x128xf32>, i32 -> vector<1x16x128xf32>
    %c44 = arith.constant 44 : index
    %215 = memref.load %arg1[%c44] : memref<48xf32, #tpu.memory_space<smem>>
    %216 = vector.broadcast %215 : f32 to vector<1x16x128xf32>
    %217 = arith.mulf %216, %213 : vector<1x16x128xf32>
    %218 = arith.addf %203, %217 : vector<1x16x128xf32>
    %c45 = arith.constant 45 : index
    %219 = memref.load %arg1[%c45] : memref<48xf32, #tpu.memory_space<smem>>
    %220 = vector.broadcast %219 : f32 to vector<1x16x128xf32>
    %221 = arith.mulf %220, %214 : vector<1x16x128xf32>
    %222 = arith.addf %218, %221 : vector<1x16x128xf32>
    %c46 = arith.constant 46 : index
    %223 = memref.load %arg1[%c46] : memref<48xf32, #tpu.memory_space<smem>>
    %224 = vector.broadcast %223 : f32 to vector<1x16x128xf32>
    %225 = arith.mulf %224, %213 : vector<1x16x128xf32>
    %226 = arith.addf %211, %225 : vector<1x16x128xf32>
    %c47 = arith.constant 47 : index
    %227 = memref.load %arg1[%c47] : memref<48xf32, #tpu.memory_space<smem>>
    %228 = vector.broadcast %227 : f32 to vector<1x16x128xf32>
    %229 = arith.mulf %228, %214 : vector<1x16x128xf32>
    %230 = arith.addf %226, %229 : vector<1x16x128xf32>
    %c15_i32 = arith.constant 15 : i32
    %231 = tpu.dynamic_rotate %230 by %c15_i32 dim 1 : vector<1x16x128xf32>, i32 -> vector<1x16x128xf32>
    %232 = arith.addf %222, %231 : vector<1x16x128xf32>
    %c0_60 = arith.constant 0 : index
    %c0_61 = arith.constant 0 : index
    %c0_62 = arith.constant 0 : index
    %233 = vector.load %arg4[%c0_60, %c0_61, %c0_62] : memref<1x16x128xf32, #tpu.memory_space<vmem>>, vector<1x16x128xf32>
    tpu.vector_store %arg4[%c0_60, %c0_61, %c0_62], %232 {strides = array<i32>} : memref<1x16x128xf32, #tpu.memory_space<vmem>>, vector<1x16x128xf32>,
    return
  }
  func.func @transform_0(%arg0: i32) -> i32 {
    %c0_i32 = arith.constant 0 : i32
    %c0_i32_0 = arith.constant 0 : i32
    return %c0_i32 : i32
  }
  func.func @transform_1(%arg0: i32) -> i32 {
    %c0_i32 = arith.constant 0 : i32
    %c0_i32_0 = arith.constant 0 : i32
    return %c0_i32 : i32
  }
  func.func @transform_2(%arg0: i32) -> (i32, i32, i32, i32) {
    %c0_i32 = arith.constant 0 : i32
    %c0_i32_0 = arith.constant 0 : i32
    %c0_i32_1 = arith.constant 0 : i32
    %c0_i32_2 = arith.constant 0 : i32
    return %arg0, %c0_i32, %c0_i32_0, %c0_i32_1 : i32, i32, i32, i32
  }
  func.func @transform_3(%arg0: i32) -> (i32, i32, i32) {
    %c0_i32 = arith.constant 0 : i32
    %c0_i32_0 = arith.constant 0 : i32
    %c0_i32_1 = arith.constant 0 : i32
    return %arg0, %c0_i32, %c0_i32_0 : i32, i32, i32
  }
}

</mosaic_0001>

<bundles_post_ra>
// kernel: tpu_custom_call.1
= control target key start
LH: loop header
LB: loop body
LE: loop exit
PB: predicated region body
PF: predicated region fallthrough
CT: control target
= control target key end

     0   :  { %s1475_s0 = inlined_call_operand.vmem [shape: f32[48], index: 0, kind: input, shape index: {}]   ;;  %s1476_s1 = inlined_call_operand.<no memory space> [shape: f32[1], index: 1, kind: input, shape index: {}]   ;;  %s1477_s2 = inlined_call_operand.hbm [shape: f32[2,12,16,128], index: 2, kind: input, shape index: {}]   ;;  %s1478_s3 = inlined_call_operand.hbm [shape: f32[2,16,128], index: 3, kind: output, shape index: {}]  }
   0x1   :  { %8 = sst [smem:[#allocation2]] %s1476_s1 }
   0x2   :  { %9 = vsyncpa [#allocation6], 0 }
   0x3   :  { %10 = vsyncpa [#allocation4], 0 }
   0x4   :  { %12 = vsyncpa [#allocation4 + $0x1], 0 }
   0x5   :  { %13 = vsyncpa [#allocation5], 0 }
   0x6   :  { %15 = vsyncpa [#allocation5 + $0x1], 0  ;;  %s985_s14 = smov 0   ;;  %s987_s15 = smov 0  }
   0x7   :  { %s989_s16 = smov 0   ;;  %s991_s17 = smov 0  }
   0x8 LB: > { %s1006_s1 = sadd.s32 4294967295, %s954_s17   ;;  %s691_s18 = sadd.s32 4294967294, %s954_s17   ;;  %s954_s17 = sphi %s991_s17, %s1489_s17   ;;  %s950_s16 = sphi %s989_s16, %s1488_s16   ;;  %s946_s15 = sphi %s987_s15, %s1487_s15   ;;  %s942_s14 = sphi %s985_s14, %s1486_s14  }
   0x9   : > { %s1010_s19 = sadd.s32 1, %s954_s17   ;;  %s70_s20 = sadd.s32 1, %s950_s16 }
   0xa   : > { %s67_s21 = ssub.s32 %s954_s17, %s1010_s19  ;;  %p77_p0 = scmp.ne.s32.totalorder %s950_s16, %s946_s15 }
   0xb   : > { %p68_p1 = scmp.eq.s32.totalorder %s67_s21, 0  ;;  %p78_p2 = scmp.eq.s32.totalorder %s954_s17, 0 }
   0xc   : > { %p83_p3 = scmp.ne.s32.totalorder %s946_s15, %s942_s14  ;;  %p84_p4 = scmp.eq.s32.totalorder %s1006_s1, 0 }
   0xd   : > { %s1022_s22 = scalar_select %p68_p1, %s950_s16, %s70_s20  }
   0xe   : > { %p1024_p5 = por %p78_p2, %p77_p0  ;;  %p1030_p6 = por %p84_p4, %p83_p3 }
   0xf   : > { %p107_p7 = scmp.eq.s32.totalorder %s1006_s1, 1  ;;  %p113_p8 = scmp.eq.s32.totalorder %s691_s18, 1 }
  0x10   : > { %p692_p9 = scmp.ge.s32.totalorder %s954_s17, 1  ;;  %p120_p10 = scmp.lt.s32.totalorder %s954_s17, 3 }
  0x11   : > { %p1037_p11 = por %p107_p7, %p77_p0  ;;  %p1041_p12 = por %p113_p8, %p83_p3 }
  0x12   : > { %p1045_p13 = pnand %p692_p9, %p120_p10  ;;  %s132_s30 = sshll.u32 %s1475_s0, 4  ;;  %s133_s30 = int_to_ptr.vmem [resolvable:$true] %s132_s30 }
  0x13   : > { %p798_p2 = scmp.lt.s32.totalorder %s954_s17, 2  ;;  %s146_s4 = sand.u32 1, %s950_s16  }
  0x14   : > { %p785_p1 = pneg %p1045_p13  ;;  %s774_s6 = smul.u32 192, %s146_s4 }
  0x15   : > { %p1061_p3 = pnand %p798_p2, %p1024_p5  ;;  %s956_s7 = smov [#allocation3]  }
  0x16   : > { %p786_p7 = pnand %p785_p1, %p84_p4  ;;  %s775_s8 = smul.u32 192, %s954_s17 }
  0x17   : > { %s150_s9 = scalar_lea.vmem [#allocation7], %s774_s6  ;;  %s147_s20 = scalar_lea.sflag [#allocation4], %s146_s4 }
  0x18   : > { %788 = dma.vmem_to_smem (!%p786_p7), %s133_s30, 16, %s956_s7, [#allocation6]  }
  0x19   : > { %s158_s10 = sshll.u32 %s150_s9, 4  ;;  %s155_s13 = scalar_lea.hbm %s1477_s2, %s775_s8  ;;  %s159_s10 = int_to_ptr.vmem [resolvable:$true] %s158_s10 }
  0x1a   : > { %s156_s18 = sshll.u32 %s155_s13, 4  ;;  %p858_p8 = pneg %p1061_p3  ;;  %s157_s18 = int_to_ptr.hbm [resolvable:$true] %s156_s18 }
  0x1b   : > { %s854_s21 = sshra.s32 %s157_s18, 4  ;;  %s861_s30 = scalar_lea.hbm %s1477_s2, 384  ;;  %s855_s21 = int_to_ptr.hbm [resolvable:$true] %s854_s21 }
  0x1c   : > { %s856_s23 = scalar_lea.hbm %s855_s21, 192  ;;  %p862_p1 = scmp.lt.s32.totalorder %s855_s21, %s1477_s2 }
  0x1d   : > { %p857_p5 = scmp.ne.s32.totalorder %s855_s21, %s856_s23  ;;  %p863_p2 = scmp.lt.s32.totalorder %s861_s30, %s856_s23 }
  0x1f   : > { %p859_p9 = pnand %p858_p8, %p857_p5  ;;  %p864_p7 = por %p863_p2, %p862_p1 }
  0x21   : > { %p860_p10 = pneg %p859_p9 }
  0x23   : > { %p865_p0 = pnand %p864_p7, %p860_p10 }
  0x25   : > { %868 = shalt.err (!%p865_p0)
}
  0x26   : > { %s957_s4 = smov 128   ;;  %s958_s8 = smov 8  }
  0x27   : > { %792 = dma.hbm_to_vmem [thread:$0]  (!%p1061_p3), %s157_s18, 3072, %s159_s10, %s147_s20, %s957_s4, %s957_s4, %s958_s8  }
  0x28   : > { %170 = sbr.rel (%p1045_p13) target bundleno = 243 (0xf3), region = 32 }
  0x2d   : > { %929 = dma.done.wait (%p84_p4), [#allocation6], 16  }
  0x2e   : > { %931 = vsyncadd (%p84_p4), [#allocation6], 4294967280  ;;  %s1086_s9 = sand.u32 1, %s946_s15  }
  0x2f   : > { %s776_s11 = smul.u32 192, %s1086_s9  ;;  %s178_s12 = scalar_lea.sflag [#allocation4], %s1086_s9 }
  0x31   : > { %s1090_s13 = scalar_lea.vmem [#allocation7], %s776_s11 }
  0x32   : > { %933 = dma.done.wait (%p1030_p6), %s178_s12, 3072  }
  0x33   : > { %935 = vsyncadd (%p1030_p6), %s178_s12, 4294964224 }
  0x34   : > { %187 = sfence }
  0x35   : > { %v1097_v0 = vld [vmem:[%s1090_s13 + $0x10] sm:$0xff]  ;;  %v1100_v1 = vld [vmem:[%s1090_s13] sm:$0xff]  ;;  %s959_s27 = smov 127   ;;  %v1112_v3 = vld [vmem:[%s1090_s13 + $0x18] sm:$0xff]  ;;  %s1216_s24 = sld [smem:[#allocation3]] }
  0x36   : > { %241 = vrot.lane.b32.xlu1 %v1097_v0, %s959_s27  ;;  %210 = vrot.lane.b32.xlu0 %v1100_v1, %s959_s27  ;;  %v1107_v2 = vld [vmem:[%s1090_s13 + $0x20] sm:$0xff]  ;;  %v1115_v4 = vld [vmem:[%s1090_s13 + $0x8] sm:$0xff]  ;;  %s1218_s5 = sld [smem:[#allocation3 + $0x4]] }
  0x37   : > { %272 = vrot.lane.b32.xlu2 %v1107_v2, %s959_s27  ;;  %v1122_v5 = vld [vmem:[%s1090_s13 + $0x28] sm:$0xff]  ;;  %v1127_v6 = vld [vmem:[%s1090_s13 + $0x38] sm:$0xff]  ;;  %v1130_v7 = vld [vmem:[%s1090_s13 + $0x30] sm:$0xff]  ;;  %s1222_s10 = sld [smem:[#allocation3 + $0x6]] }
  0x38   : > { %v1137_v8 = vld [vmem:[%s1090_s13 + $0x40] sm:$0xff]  ;;  %v1142_v9 = vld [vmem:[%s1090_s13 + $0x50] sm:$0xff]  ;;  %v1145_v10 = vld [vmem:[%s1090_s13 + $0x48] sm:$0xff]  ;;  %s1224_s18 = sld [smem:[#allocation3 + $0x2]] }
  0x39   : > { %v1152_v11 = vld [vmem:[%s1090_s13 + $0x58] sm:$0xff]  ;;  %v1157_v12 = vld [vmem:[%s1090_s13 + $0x68] sm:$0xff]  ;;  %v1160_v13 = vld [vmem:[%s1090_s13 + $0x60] sm:$0xff]  ;;  %s1226_s20 = sld [smem:[#allocation2]] }
  0x3a   : > { %v1167_v14 = vld [vmem:[%s1090_s13 + $0x70] sm:$0xff]  ;;  %v1172_v15 = vld [vmem:[%s1090_s13 + $0x80] sm:$0xff]  ;;  %v1175_v16 = vld [vmem:[%s1090_s13 + $0x78] sm:$0xff]  ;;  %s1228_s21 = sld [smem:[#allocation3 + $0x1]] }
  0x3b   : > { %v1182_v17 = vld [vmem:[%s1090_s13 + $0x88] sm:$0xff]  ;;  %v1187_v18 = vld [vmem:[%s1090_s13 + $0x98] sm:$0xff]  ;;  %v1190_v19 = vld [vmem:[%s1090_s13 + $0x90] sm:$0xff]  ;;  %s1230_s23 = sld [smem:[#allocation3 + $0x3]]  ;;  %v215_v25 = vstv %s1216_s24 }
  0x3c   : > { %v1197_v20 = vld [vmem:[%s1090_s13 + $0xa0] sm:$0xff]  ;;  %v1202_v21 = vld [vmem:[%s1090_s13 + $0xb0] sm:$0xff]  ;;  %v1205_v22 = vld [vmem:[%s1090_s13 + $0xa8] sm:$0xff]  ;;  %s1232_s28 = sld [smem:[#allocation3 + $0x5]]  ;;  %v216_v26 = vmul.f32 %v215_v25, %v1100_v1  ;;  %v246_v30 = vstv %s1218_s5  ;;  %v217_v50 = vmul.f32 %v215_v25, %v1115_v4 }
  0x3d   : > { %v1212_v23 = vld [vmem:[%s1090_s13 + $0xb8] sm:$0xff]  ;;  %s1235_s29 = sld [smem:[#allocation3 + $0x7]]  ;;  %v258_v31 = vstv %s1222_s10  ;;  %v247_v40 = vmul.f32 %v1097_v0, %v246_v30  ;;  %v248_v58 = vmul.f32 %v1112_v3, %v246_v30 }
  0x3e   : > { %243 = vrot.lane.b32.xlu1 %v1112_v3, %s959_s27  ;;  %212 = vrot.lane.b32.xlu0 %v1115_v4, %s959_s27  ;;  %s1237_s30 = sld [smem:[#allocation3 + $0x8]]  ;;  %v227_v28 = vstv %s1224_s18  ;;  %v259_v41 = vmul.f32 %v1097_v0, %v258_v31  ;;  %v260_v59 = vmul.f32 %v1112_v3, %v258_v31 }
  0x3f   : > { %274 = vrot.lane.b32.xlu2 %v1122_v5, %s959_s27  ;;  %s1239_s6 = sld [smem:[#allocation3 + $0xa]]  ;;  %v207_v29 = vstv %s1226_s20  ;;  %v228_v34 = vmul.f32 %v227_v28, %v1100_v1  ;;  %v229_v62 = vmul.f32 %v227_v28, %v1115_v4 }
  0x40   : > { %s1242_s7 = sld [smem:[#allocation3 + $0xc]]  ;;  %v221_v32 = vstv %s1228_s21  ;;  %v218_v35 = vadd.f32 %v216_v26, %v207_v29  ;;  %v219_v28 = vadd.f32 %v217_v50, %v207_v29 }
  0x41   : > { %s1247_s4 = sld [smem:[#allocation3 + $0xe]]  ;;  %v233_v33 = vstv %s1230_s23 }
  0x42   : > { %s1250_s8 = sld [smem:[#allocation3 + $0x9]]  ;;  %v252_v36 = vstv %s1232_s28 }
  0x43   : > { %s1256_s11 = sld [smem:[#allocation3 + $0xb]]  ;;  %v264_v37 = vstv %s1235_s29 }
  0x44   : > { %s1259_s12 = sld [smem:[#allocation3 + $0x14]]  ;;  %v277_v44 = vstv %s1237_s30 }
  0x45   : > { %s1265_s13 = sld [smem:[#allocation3 + $0x16]]  ;;  %v289_v45 = vstv %s1239_s6  ;;  %v278_v53 = vmul.f32 %v1107_v2, %v277_v44 }
  0x46   : > { %305 = vrot.lane.b32.xlu1 %v1127_v6, %s959_s27  ;;  %303 = vrot.lane.b32.xlu0 %v1130_v7, %s959_s27  ;;  %s1271_s24 = sld [smem:[#allocation3 + $0x12]]  ;;  %v308_v51 = vstv %s1242_s7  ;;  %v290_v54 = vmul.f32 %v1107_v2, %v289_v45 }
  0x47   : > { %334 = vrot.lane.b32.xlu2 %v1137_v8, %s959_s27  ;;  %v320_v52 = vstv %s1247_s4  ;;  %s1278_s5 = sld [smem:[#allocation3 + $0xd]]  ;;  %v1290_v63 = vmul.f32 %v1127_v6, %v308_v51  ;;  %v309_v3 = vmul.f32 %v1130_v7, %v308_v51 }
  0x48   : > { %v283_v60 = vstv %s1250_s8  ;;  %s1286_s10 = sld [smem:[#allocation3 + $0xf]]  ;;  %v1295_v2 = vmul.f32 %v1127_v6, %v320_v52  ;;  %v321_v25 = vmul.f32 %v1130_v7, %v320_v52 }
  0x49   : > { %v295_v61 = vstv %s1256_s11  ;;  %s1292_s18 = sld [smem:[#allocation3 + $0x11]] }
  0x4a   : > { %s1299_s20 = sld [smem:[#allocation3 + $0x13]] }
  0x4b   : > { %s1301_s21 = sld [smem:[#allocation3 + $0x18]] }
  0x4c   : > { %v351_v7 = vstv %s1271_s24  ;;  %s1309_s23 = sld [smem:[#allocation3 + $0x1a]] }
  0x4d   : > { %s1313_s28 = sld [smem:[#allocation3 + $0x15]]  ;;  %v314_v52 = vstv %s1278_s5 }
  0x4e   : > { %365 = vrot.lane.b32.xlu1 %v1142_v9, %s959_s27  ;;  %336 = vrot.lane.b32.xlu0 %v1145_v10, %s959_s27  ;;  %s1317_s29 = sld [smem:[#allocation3 + $0x17]] }
  0x4f   : > { %367 = vrot.lane.b32.xlu2 %v1152_v11, %s959_s27  ;;  %s1332_s30 = sld [smem:[#allocation3 + $0x20]] }
  0x50   : > { %s1335_s6 = sld [smem:[#allocation3 + $0x1c]] }
  0x51   : > { %s1339_s7 = sld [smem:[#allocation3 + $0x1e]] }
  0x52   : > { %s1343_s4 = sld [smem:[#allocation3 + $0x22]] }
  0x53   : > { %s1347_s8 = sld [smem:[#allocation3 + $0x19]] }
  0x54   : > { %s1353_s11 = sld [smem:[#allocation3 + $0x1b]] }
  0x55   : > { %s1365_s24 = sld [smem:[#allocation3 + $0x1f]] }
  0x56   : > { %398 = vrot.lane.b32.xlu1 %v1157_v12, %s959_s27  ;;  %396 = vrot.lane.b32.xlu0 %v1160_v13, %s959_s27  ;;  %s1377_s5 = sld [smem:[#allocation3 + $0x21]] }
  0x57   : > { %427 = vrot.lane.b32.xlu2 %v1167_v14, %s959_s27 }
  0x5e   : > { %458 = vrot.lane.b32.xlu1 %v1172_v15, %s959_s27  ;;  %429 = vrot.lane.b32.xlu0 %v1175_v16, %s959_s27 }
  0x5f   : > { %460 = vrot.lane.b32.xlu2 %v1182_v17, %s959_s27 }
  0x66   : > { %491 = vrot.lane.b32.xlu1 %v1187_v18, %s959_s27  ;;  %489 = vrot.lane.b32.xlu0 %v1190_v19, %s959_s27 }
  0x67   : > { %520 = vrot.lane.b32.xlu2 %v1197_v20, %s959_s27 }
  0x6e   : > { %551 = vrot.lane.b32.xlu1 %v1202_v21, %s959_s27  ;;  %522 = vrot.lane.b32.xlu0 %v1205_v22, %s959_s27 }
  0x6f   : > { %553 = vrot.lane.b32.xlu2 %v1212_v23, %s959_s27  ;;  %s1267_s27 = sld [smem:[#allocation3 + $0x10]] }
  0x91   : > { %v1220_v24 = vpop.permute.xlu2 %272 }
  0x92   : > { %v284_v31 = vmul.f32 %v283_v60, %v1220_v24  ;;  %v296_v6 = vmul.f32 %v295_v61, %v1220_v24  ;;  %v279_v24 = vmul.f32 %v1122_v5, %v277_v44 }
  0x99   : > { %v1244_v27 = vpop.permute.xlu2 %274 }
  0xa1   : > { %v1280_v57 = vpop.permute.xlu2 %334 }
  0xa8   : > { %v242_v38 = vpop.permute.xlu1 %241  ;;  %v211_v39 = vpop.permute.xlu0 %210 }
  0xa9   : > { %v222_v42 = vmul.f32 %v221_v32, %v211_v39  ;;  %v234_v43 = vmul.f32 %v233_v33, %v211_v39  ;;  %v253_v46 = vmul.f32 %v252_v36, %v242_v38  ;;  %v265_v47 = vmul.f32 %v264_v37, %v242_v38 }
  0xaa   : > { %v382_v38 = vstv %s1265_s13  ;;  %s1371_s13 = sld [smem:[#allocation3 + $0x26]] }
  0xab   : > { %v224_v48 = vadd.f32 %v222_v42, %v218_v35  ;;  %v236_v49 = vadd.f32 %v234_v43, %v228_v34  ;;  %v370_v35 = vstv %s1259_s12  ;;  %s1369_s12 = sld [smem:[#allocation3 + $0x24]] }
  0xad   : > { %v249_v55 = vadd.f32 %v247_v40, %v224_v48  ;;  %v261_v56 = vadd.f32 %v259_v41, %v236_v49  ;;  %v339_v41 = vstv %s1267_s27  ;;  %v291_v49 = vmul.f32 %v1122_v5, %v289_v45  ;;  %v1327_v45 = vpop.permute.xlu2 %367  ;;  %s1359_s27 = sld [smem:[#allocation3 + $0x1d]] }
  0xae   : > { %v341_v5 = vmul.f32 %v1145_v10, %v339_v41  ;;  %v340_v44 = vmul.f32 %v1137_v8, %v339_v41  ;;  %v353_v41 = vmul.f32 %v1145_v10, %v351_v7 }
  0xaf   : > { %v255_v0 = vadd.f32 %v253_v46, %v249_v55  ;;  %v267_v1 = vadd.f32 %v265_v47, %v261_v56 }
  0xb0   : > { %v244_v26 = vpop.permute.xlu1 %243  ;;  %v213_v4 = vpop.permute.xlu0 %212 }
  0xb1   : > { %v280_v30 = vadd.f32 %v278_v53, %v255_v0  ;;  %v292_v34 = vadd.f32 %v290_v54, %v267_v1  ;;  %v223_v39 = vmul.f32 %v221_v32, %v213_v4  ;;  %v235_v40 = vmul.f32 %v233_v33, %v213_v4 }
  0xb2   : > { %v254_v43 = vmul.f32 %v252_v36, %v244_v26  ;;  %v266_v46 = vmul.f32 %v264_v37, %v244_v26  ;;  %v326_v53 = vstv %s1286_s10  ;;  %v371_v36 = vmul.f32 %v1142_v9, %v370_v35  ;;  %s1381_s10 = sld [smem:[#allocation3 + $0x23]] }
  0xb3   : > { %v286_v42 = vadd.f32 %v284_v31, %v280_v30  ;;  %v298_v29 = vadd.f32 %v296_v6, %v292_v34  ;;  %v225_v47 = vadd.f32 %v223_v39, %v219_v28  ;;  %v237_v48 = vadd.f32 %v235_v40, %v229_v62 }
  0xb4   : > { %v383_v37 = vmul.f32 %v1142_v9, %v382_v38  ;;  %v357_v62 = vstv %s1299_s20  ;;  %v401_v0 = vstv %s1301_s21  ;;  %v352_v1 = vmul.f32 %v1137_v8, %v351_v7  ;;  %s1393_s20 = sld [smem:[#allocation3 + $0x28]] }
  0xb5   : > { %v311_v32 = vadd.f32 %v309_v3, %v286_v42  ;;  %v323_v33 = vadd.f32 %v321_v25, %v298_v29  ;;  %v250_v50 = vadd.f32 %v248_v58, %v225_v47  ;;  %v262_v51 = vadd.f32 %v260_v59, %v237_v48  ;;  %s1395_s21 = sld [smem:[#allocation3 + $0x2a]] }
  0xb6   : > { %v345_v59 = vstv %s1292_s18  ;;  %v285_v26 = vmul.f32 %v283_v60, %v1244_v27  ;;  %v297_v28 = vmul.f32 %v295_v61, %v1244_v27  ;;  %v358_v8 = vmul.f32 %v357_v62, %v1280_v57  ;;  %s1389_s18 = sld [smem:[#allocation3 + $0x2c]] }
  0xb7   : > { %v256_v54 = vadd.f32 %v254_v43, %v250_v50  ;;  %v268_v55 = vadd.f32 %v266_v46, %v262_v51  ;;  %v346_v34 = vmul.f32 %v345_v59, %v1280_v57  ;;  %v413_v27 = vstv %s1309_s23  ;;  %s1399_s23 = sld [smem:[#allocation3 + $0x2e]] }
  0xb8   : > { %v306_v56 = vpop.permute.xlu1 %305  ;;  %v304_v58 = vpop.permute.xlu0 %303  ;;  %v376_v57 = vstv %s1313_s28  ;;  %v388_v46 = vstv %s1317_s29  ;;  %v402_v47 = vmul.f32 %v1160_v13, %v401_v0  ;;  %v372_v48 = vmul.f32 %v1152_v11, %v370_v35  ;;  %s1403_s28 = sld [smem:[#allocation3 + $0x25]] }
  0xb9   : > { %v315_v3 = vmul.f32 %v314_v52, %v304_v58  ;;  %v327_v25 = vmul.f32 %v326_v53, %v304_v58  ;;  %v281_v9 = vadd.f32 %v279_v24, %v256_v54  ;;  %v293_v4 = vadd.f32 %v291_v49, %v268_v55  ;;  %s1407_s29 = sld [smem:[#allocation3 + $0x27]] }
  0xba   : > { %v316_v40 = vmul.f32 %v314_v52, %v306_v56  ;;  %v328_v60 = vmul.f32 %v326_v53, %v306_v56  ;;  %v414_v24 = vmul.f32 %v1160_v13, %v413_v27  ;;  %v428_v53 = vpop.permute.xlu2 %427  ;;  %v432_v56 = vstv %s1335_s6  ;;  %s1413_s6 = sld [smem:[#allocation3 + $0x2b]] }
  0xbb   : > { %v317_v30 = vadd.f32 %v315_v3, %v311_v32  ;;  %v329_v31 = vadd.f32 %v327_v25, %v323_v33  ;;  %v287_v6 = vadd.f32 %v285_v26, %v281_v9  ;;  %v299_v39 = vadd.f32 %v297_v28, %v293_v4 }
  0xbc   : > { %v444_v58 = vstv %s1339_s7  ;;  %v407_v4 = vstv %s1347_s8  ;;  %v419_v28 = vstv %s1353_s11  ;;  %s1423_s7 = sld [smem:[#allocation3 + $0x2f]]  ;;  %s698_s8 = sshll.u32 %s1086_s9, 4 }
  0xbd   : > { %v342_v61 = vadd.f32 %v340_v44, %v317_v30  ;;  %v354_v42 = vadd.f32 %v352_v1, %v329_v31  ;;  %v312_v29 = vadd.f32 %v1290_v63, %v287_v6  ;;  %v324_v43 = vadd.f32 %v1295_v2, %v299_v39  ;;  %s773_s11 = sshll.u32 %s1006_s1, 4  ;;  %s591_s1 = scalar_lea.sflag [#allocation5], %s1086_s9 }
  0xbe   : > { %v384_v63 = vmul.f32 %v1152_v11, %v382_v38  ;;  %v378_v1 = vmul.f32 %v376_v57, %v1327_v45  ;;  %v463_v30 = vstv %s1332_s30  ;;  %v475_v31 = vstv %s1343_s4  ;;  %s1409_s30 = sld [smem:[#allocation3 + $0x29]] }
  0xbf   : > { %v348_v10 = vadd.f32 %v346_v34, %v342_v61  ;;  %v360_v7 = vadd.f32 %v358_v8, %v354_v42  ;;  %v318_v2 = vadd.f32 %v316_v40, %v312_v29  ;;  %v330_v49 = vadd.f32 %v328_v60, %v324_v43  ;;  %s1433_s4 = sld [smem:[#allocation3 + $0x2d]] }
  0xc0   : > { %v366_v32 = vpop.permute.xlu1 %365  ;;  %v337_v33 = vpop.permute.xlu0 %336  ;;  %v438_v39 = vstv %s1359_s27  ;;  %v450_v40 = vstv %s1365_s24  ;;  %v434_v42 = vmul.f32 %v1175_v16, %v432_v56  ;;  %v446_v29 = vmul.f32 %v1175_v16, %v444_v58 }
  0xc1   : > { %v373_v50 = vadd.f32 %v371_v36, %v348_v10  ;;  %v377_v51 = vmul.f32 %v376_v57, %v366_v32  ;;  %v385_v35 = vadd.f32 %v383_v37, %v360_v7  ;;  %v389_v52 = vmul.f32 %v388_v46, %v366_v32 }
  0xc2   : > { %v355_v44 = vadd.f32 %v353_v41, %v330_v49  ;;  %v343_v54 = vadd.f32 %v341_v5, %v318_v2  ;;  %v347_v55 = vmul.f32 %v345_v59, %v337_v33  ;;  %v359_v13 = vmul.f32 %v357_v62, %v337_v33  ;;  %v461_v10 = vpop.permute.xlu2 %460 }
  0xc3   : > { %v379_v11 = vadd.f32 %v377_v51, %v373_v50  ;;  %v391_v38 = vadd.f32 %v389_v52, %v385_v35  ;;  %v390_v5 = vmul.f32 %v388_v46, %v1327_v45  ;;  %v403_v59 = vmul.f32 %v1157_v12, %v401_v0 }
  0xc4   : > { %v349_v36 = vadd.f32 %v347_v55, %v343_v54  ;;  %v361_v37 = vadd.f32 %v359_v13, %v355_v44  ;;  %v415_v62 = vmul.f32 %v1157_v12, %v413_v27  ;;  %v433_v45 = vmul.f32 %v1167_v14, %v432_v56 }
  0xc5   : > { %v404_v3 = vadd.f32 %v402_v47, %v379_v11  ;;  %v416_v25 = vadd.f32 %v414_v24, %v391_v38  ;;  %v445_v0 = vmul.f32 %v1167_v14, %v444_v58  ;;  %v439_v47 = vmul.f32 %v438_v39, %v428_v53 }
  0xc6   : > { %v374_v9 = vadd.f32 %v372_v48, %v349_v36  ;;  %v386_v26 = vadd.f32 %v384_v63, %v361_v37  ;;  %v451_v48 = vmul.f32 %v450_v40, %v428_v53  ;;  %v464_v7 = vmul.f32 %v1172_v15, %v463_v30 }
  0xc7   : > { %v476_v24 = vmul.f32 %v1172_v15, %v475_v31  ;;  %v494_v2 = vstv %s1369_s12  ;;  %v506_v49 = vstv %s1371_s13  ;;  %v469_v50 = vstv %s1377_s5  ;;  %s602_s12 = scalar_lea.hbm %s1478_s3, %s773_s11  ;;  %s205_s13 = scalar_lea.vmem [#allocation8], %s698_s8 }
  0xc8   : > { %v380_v34 = vadd.f32 %v378_v1, %v374_v9  ;;  %v392_v12 = vadd.f32 %v390_v5, %v386_v26  ;;  %v399_v8 = vpop.permute.xlu1 %398  ;;  %v397_v6 = vpop.permute.xlu0 %396  ;;  %v481_v51 = vstv %s1381_s10  ;;  %v495_v15 = vmul.f32 %v1190_v19, %v494_v2  ;;  %s603_s5 = sshll.u32 %s205_s13, 4  ;;  %s605_s10 = sshll.u32 %s602_s12, 4  ;;  %s604_s5 = int_to_ptr.vmem [resolvable:$true] %s603_s5  ;;  %s606_s10 = int_to_ptr.hbm [resolvable:$true] %s605_s10 }
  0xc9   : > { %v409_v60 = vmul.f32 %v407_v4, %v399_v8  ;;  %v421_v41 = vmul.f32 %v419_v28, %v399_v8  ;;  %v408_v27 = vmul.f32 %v407_v4, %v397_v6  ;;  %v420_v61 = vmul.f32 %v419_v28, %v397_v6 }
  0xca   : > { %v405_v14 = vadd.f32 %v403_v59, %v380_v34  ;;  %v417_v43 = vadd.f32 %v415_v62, %v392_v12  ;;  %v507_v54 = vmul.f32 %v1190_v19, %v506_v49  ;;  %v465_v36 = vmul.f32 %v1182_v17, %v463_v30 }
  0xcb   : > { %v410_v57 = vadd.f32 %v408_v27, %v404_v3  ;;  %v422_v46 = vadd.f32 %v420_v61, %v416_v25  ;;  %v477_v37 = vmul.f32 %v1182_v17, %v475_v31  ;;  %v525_v59 = vstv %s1393_s20  ;;  %v521_v31 = vpop.permute.xlu2 %520 }
  0xcc   : > { %v411_v16 = vadd.f32 %v409_v60, %v405_v14  ;;  %v423_v63 = vadd.f32 %v421_v41, %v417_v43  ;;  %v537_v62 = vstv %s1395_s21  ;;  %v471_v26 = vmul.f32 %v469_v50, %v461_v10 }
  0xcd   : > { %v435_v32 = vadd.f32 %v433_v45, %v410_v57  ;;  %v447_v33 = vadd.f32 %v445_v0, %v422_v46  ;;  %v483_v4 = vmul.f32 %v481_v51, %v461_v10  ;;  %v496_v28 = vmul.f32 %v1187_v18, %v494_v2 }
  0xce   : > { %v448_v35 = vadd.f32 %v446_v29, %v423_v63  ;;  %v436_v52 = vadd.f32 %v434_v42, %v411_v16  ;;  %v508_v30 = vmul.f32 %v1187_v18, %v506_v49  ;;  %v500_v12 = vstv %s1403_s28  ;;  %s904_s28 = scalar_lea.hbm %s1478_s3, 32 }
  0xcf   : > { %v441_v53 = vadd.f32 %v439_v47, %v435_v32  ;;  %v453_v44 = vadd.f32 %v451_v48, %v447_v33  ;;  %v512_v8 = vstv %s1407_s29  ;;  %v556_v6 = vstv %s1389_s18  ;;  %s898_s18 = sshra.s32 %s606_s10, 4  ;;  %s899_s18 = int_to_ptr.hbm [resolvable:$true] %s898_s18 }
  0xd0   : > { %v459_v55 = vpop.permute.xlu1 %458  ;;  %v430_v13 = vpop.permute.xlu0 %429  ;;  %v538_v60 = vmul.f32 %v1197_v20, %v537_v62  ;;  %v531_v42 = vstv %s1409_s30  ;;  %v543_v29 = vstv %s1413_s6  ;;  %v527_v47 = vmul.f32 %v1205_v22, %v525_v59  ;;  %s900_s20 = scalar_lea.hbm %s899_s18, 16  ;;  %p905_p0 = scmp.lt.s32.totalorder %s899_s18, %s1478_s3 }
  0xd1   : > { %v466_v56 = vadd.f32 %v464_v7, %v441_v53  ;;  %v470_v58 = vmul.f32 %v469_v50, %v459_v55  ;;  %v478_v11 = vadd.f32 %v476_v24, %v453_v44  ;;  %v482_v38 = vmul.f32 %v481_v51, %v459_v55  ;;  %p901_p4 = scmp.ne.s32.totalorder %s899_s18, %s900_s20  ;;  %p906_p3 = scmp.lt.s32.totalorder %s904_s28, %s900_s20 }
  0xd2   : > { %v440_v1 = vmul.f32 %v438_v39, %v430_v13  ;;  %v452_v5 = vmul.f32 %v450_v40, %v430_v13  ;;  %v568_v39 = vstv %s1399_s23  ;;  %v526_v40 = vmul.f32 %v1197_v20, %v525_v59 }
  0xd3   : > { %v472_v3 = vadd.f32 %v470_v58, %v466_v56  ;;  %v484_v19 = vadd.f32 %v482_v38, %v478_v11  ;;  %v539_v48 = vmul.f32 %v1205_v22, %v537_v62  ;;  %v532_v20 = vmul.f32 %v531_v42, %v521_v31  ;;  %p902_p6 = pnand %p901_p4, %p1037_p11  ;;  %p907_p5 = por %p906_p3, %p905_p0 }
  0xd4   : > { %v442_v25 = vadd.f32 %v440_v1, %v436_v52  ;;  %v454_v9 = vadd.f32 %v452_v5, %v448_v35  ;;  %v544_v63 = vmul.f32 %v543_v29, %v521_v31  ;;  %v557_v32 = vmul.f32 %v1202_v21, %v556_v6 }
  0xd5   : > { %v497_v45 = vadd.f32 %v495_v15, %v472_v3  ;;  %v509_v17 = vadd.f32 %v507_v54, %v484_v19  ;;  %v569_v51 = vmul.f32 %v1202_v21, %v568_v39  ;;  %v574_v35 = vstv %s1423_s7  ;;  %v554_v15 = vpop.permute.xlu2 %553  ;;  %p903_p13 = pneg %p902_p6 }
  0xd6   : > { %v467_v0 = vadd.f32 %v465_v36, %v442_v25  ;;  %v479_v34 = vadd.f32 %v477_v37, %v454_v9  ;;  %v558_v54 = vmul.f32 %v1212_v23, %v556_v6  ;;  %v581_v56 = vlaneseq }
  0xd7   : > { %v570_v58 = vmul.f32 %v1212_v23, %v568_v39  ;;  %v562_v1 = vstv %s1433_s4  ;;  %v576_v62 = vmul.f32 %v574_v35, %v554_v15  ;;  %p908_p8 = pnand %p907_p5, %p903_p13 }
  0xd8   : > { %v473_v41 = vadd.f32 %v471_v26, %v467_v0  ;;  %v485_v27 = vadd.f32 %v483_v4, %v479_v34  ;;  %v492_v18 = vpop.permute.xlu1 %491  ;;  %v490_v61 = vpop.permute.xlu0 %489  ;;  %v582_v3 = vshrl.u32 %v581_v56, 7  ;;  %v564_v4 = vmul.f32 %v562_v1, %v554_v15 }
  0xd9   : > { %v502_v14 = vmul.f32 %v500_v12, %v492_v18  ;;  %v514_v43 = vmul.f32 %v512_v8, %v492_v18  ;;  %v501_v57 = vmul.f32 %v500_v12, %v490_v61  ;;  %v513_v46 = vmul.f32 %v512_v8, %v490_v61 }
  0xda   : > { %v498_v10 = vadd.f32 %v496_v28, %v473_v41  ;;  %v510_v7 = vadd.f32 %v508_v30, %v485_v27  ;;  %vm583_vm0 = vcmp.lt.s32.totalorder %v582_v3, 7 }
  0xdb   : > { %v503_v24 = vadd.f32 %v501_v57, %v497_v45  ;;  %v515_v16 = vadd.f32 %v513_v46, %v509_v17 }
  0xdc   : > { %v504_v2 = vadd.f32 %v502_v14, %v498_v10  ;;  %v516_v49 = vadd.f32 %v514_v43, %v510_v7 }
  0xdd   : > { %v528_v33 = vadd.f32 %v526_v40, %v503_v24  ;;  %v540_v50 = vadd.f32 %v538_v60, %v515_v16 }
  0xde   : > { %v541_v52 = vadd.f32 %v539_v48, %v516_v49  ;;  %v529_v22 = vadd.f32 %v527_v47, %v504_v2 }
  0xdf   : > { %v534_v53 = vadd.f32 %v532_v20, %v528_v33  ;;  %v546_v44 = vadd.f32 %v544_v63, %v540_v50 }
  0xe0   : > { %v552_v55 = vpop.permute.xlu1 %551  ;;  %v523_v13 = vpop.permute.xlu0 %522 }
  0xe1   : > { %v575_v11 = vmul.f32 %v574_v35, %v552_v55  ;;  %v533_v38 = vmul.f32 %v531_v42, %v523_v13  ;;  %v545_v36 = vmul.f32 %v543_v29, %v523_v13  ;;  %v559_v21 = vadd.f32 %v557_v32, %v534_v53 }
  0xe2   : > { %v571_v37 = vadd.f32 %v569_v51, %v546_v44  ;;  %v563_v26 = vmul.f32 %v562_v1, %v552_v55 }
  0xe3   : > { %v535_v5 = vadd.f32 %v533_v38, %v529_v22  ;;  %v547_v59 = vadd.f32 %v545_v36, %v541_v52 }
  0xe4   : > { %v577_v19 = vadd.f32 %v575_v11, %v571_v37  ;;  %v565_v45 = vadd.f32 %v563_v26, %v559_v21 }
  0xe5   : > { %v560_v25 = vadd.f32 %v558_v54, %v535_v5  ;;  %v572_v9 = vadd.f32 %v570_v58, %v547_v59 }
  0xe6   : > { %v579_v28 = vrot.slane %v577_v19, 1 }
  0xe7   : > { %v578_v23 = vadd.f32 %v576_v62, %v572_v9  ;;  %v566_v17 = vadd.f32 %v564_v4, %v560_v25 }
  0xe9   : > { %v580_v30 = vrot.slane %v578_v23, 1 }
  0xeb   : > { %v584_v31 = vsel %vm583_vm0, %v579_v28, %v580_v30  ;;  %v585_v0 = vsel %vm583_vm0, %v580_v30, %v579_v28 }
  0xec   : > { %v586_v34 = vadd.f32 %v584_v31, %v565_v45  ;;  %v587_v12 = vadd.f32 %v585_v0, %v566_v17 }
  0xee   : > { %588 = vst [vmem:[%s205_s13] sm:$0xff] %v586_v34 }
  0xef   : > { %589 = vst [vmem:[%s205_s13 + $0x8] sm:$0xff] %v587_v12 }
  0xf0   : > { %911 = shalt.err (!%p908_p8)
}
  0xf1   : > { %s960_s9 = smov 128   ;;  %s961_s6 = smov 8  }
  0xf2   : > { %783 = dma.vmem_to_hbm [thread:$0]  (%p1037_p11), %s604_s5, 256, %s606_s10, %s591_s1, %s960_s9, %s960_s9, %s961_s6  }
  0xf3 PF: > { %s620_s7 = sand.u32 1, %s942_s14   ;;  %p1485_p9 = scmp.ge.s32.totalorder %s954_s17, 2 }
  0xf4   : > { %s621_s4 = scalar_lea.sflag [#allocation5], %s620_s7 }
  0xf5   : > { %p794_p10 = pnand %p1485_p9, %p1041_p12 }
  0xf7   : > { %p795_p1 = pneg %p794_p10 }
  0xf9   : > { %937 = dma.done.wait (%p795_p1), %s621_s4, 256  }
  0xfa   : > { %939 = vsyncadd (%p795_p1), %s621_s4, 4294967040  ;;  %p18_p2 = scmp.ge.s32.totalorder %s1010_s19, 4   ;;  %s1486_s14 = smov %s946_s15 }
  0xfb   : > { %s1487_s15 = smov %s950_s16  ;;  %s1488_s16 = smov %s1022_s22 }
  0xfc   : > { %s1489_s17 = smov %s1010_s19  ;;  %20 = sbr.rel (!%p18_p2) target bundleno = 8 (0x8), region = 93 }
 0x101   :  { %627 = vsyncpa [#allocation4], 1 }
 0x102   :  { %629 = vsyncpa [#allocation4 + $0x1], 1 }
 0x103   :  { %630 = vsyncpa [#allocation5], 1 }
 0x104   :  { %632 = vsyncpa [#allocation5 + $0x1], 1 }
 0x105   :  { %633 = vsyncpa [#allocation6], 1 }
 0x106   :  { %635 = vsyncpa [#allocation6 + $0x1], 1 }

</bundles_post_ra>
